<compile_context>
chip_gen: v6e
topology: v6e:2x2x1
jax: 0.10.0
libtpu: 0.0.40
codegen_flags: <defaults>
</compile_context>

<pallas_src>
import functools

import jax
import jax.numpy as jnp
from jax import lax
from jax.experimental import pallas as pl
from jax.experimental.pallas import tpu as pltpu


def _round_up(x, m):
    return ((x + m - 1) // m) * m


def _choose_out_tile(total_out, wp, cin_pad, cout, itemsize, max_out_tile):
    """Largest multiple-of-128 output tile whose double-buffered blocks fit VMEM."""
    vmem_budget = 12 * 1024 * 1024  # conservative: under every generation's scoped default
    cap = max(_round_up(total_out, 128), 128)
    if max_out_tile is not None:
        cap = min(cap, max(_round_up(max_out_tile, 128), 128))
    best = 128
    t = 128
    while t <= cap:
        in_tile = _round_up(t + 2 * wp + 2, 128)
        need = 2 * (cin_pad * in_tile + cout * t + cout * 9 * cin_pad + cout) * itemsize
        if need <= vmem_budget:
            best = t
        t += 128
    return best


def _conv3x3_elu_kernel(x_ref, w_ref, b_ref, o_ref, *, tap_offsets, out_tile):
    # x_ref: (1, 1, Cin_pad, IN_TILE)  flattened padded input tile (one sample, one spatial tile)
    # w_ref: (Cout, 9*Cin_pad)         resident (constant index_map)
    # b_ref: (Cout, 1)                 resident
    # o_ref: (1, Cout, OUT_TILE)       lane-dense output tile
    x = x_ref[0, 0]                                       # (Cin_pad, IN_TILE), VMEM
    # 9 shifted tap views fused along the contraction axis -> (9*Cin_pad, OUT_TILE).
    xmat = jnp.concatenate(
        [x[:, off:off + out_tile] for off in tap_offsets], axis=0
    )
    acc = jnp.dot(w_ref[...], xmat, preferred_element_type=jnp.float32)  # (Cout, OUT_TILE)
    acc = acc + b_ref[...]
    # ELU (alpha = 1).  Clamp the exp argument so the unselected branch never hits inf.
    # TODO(synk): use jnp.expm1 once Mosaic lowering support for expm1 is guaranteed.
    neg = jnp.exp(jnp.minimum(acc, 0.0)) - 1.0
    o_ref[0] = jnp.where(acc > 0, acc, neg).astype(o_ref.dtype)


@functools.partial(jax.jit, static_argnames=("max_out_tile", "compute_dtype"))
def conv_block_forward(x_nchw, weight, bias, *, max_out_tile=None,
                       compute_dtype=jnp.float32):
    """ConvBlock forward (ReflectionPad2d(1) -> Conv2d 3x3 -> ELU).

    x_nchw : (N, Cin, H, W)  float32
    weight : (Cout, Cin, 3, 3) float32 (PyTorch layout)
    bias   : (Cout,) float32
    returns: (N, Cout, H, W) float32
    """
    n, cin, h, w = x_nchw.shape
    cout = weight.shape[0]
    hp, wp = h + 2, w + 2
    total_out = h * wp                      # flat output columns per sample (incl. 2 garbage cols/row)

    # Pad channels to a sublane multiple so the in-kernel tap concat is aligned.
    sub = 16 if jnp.dtype(compute_dtype).itemsize == 2 else 8
    cin_pad = _round_up(cin, sub)

    itemsize = jnp.dtype(compute_dtype).itemsize
    out_tile = _choose_out_tile(total_out, wp, cin_pad, cout, max(itemsize, 4), max_out_tile)
    in_tile = _round_up(out_tile + 2 * wp + 2, 128)
    rt = -(-total_out // out_tile)          # ceil
    out_len_pad = rt * out_tile
    in_len_pad = (rt - 1) * out_tile + in_tile

    # --- glue: layout only (reflection pad, flatten, halo'd spatial tiles) ---
    xp = jnp.pad(x_nchw, ((0, 0), (0, 0), (1, 1), (1, 1)), mode="reflect")   # (N, Cin, Hp, Wp)
    xp_flat = xp.astype(compute_dtype).reshape(n, cin, hp * wp)
    xp_flat = jnp.pad(xp_flat, ((0, 0), (0, cin_pad - cin), (0, in_len_pad - hp * wp)))
    # Overlapping spatial tiles with a 2-row halo (tiny duplication; only matters when rt > 1).
    x_tiles = jnp.stack(
        [xp_flat[:, :, r * out_tile: r * out_tile + in_tile] for r in range(rt)], axis=1
    )                                                                         # (N, RT, Cin_pad, IN_TILE)

    # (Cout, Cin, 3, 3) -> (Cout, 3, 3, Cin_pad) -> (Cout, 9*Cin_pad): column = (ky*3+kx)*Cin_pad + ci
    w_p = jnp.pad(weight, ((0, 0), (0, cin_pad - cin), (0, 0), (0, 0))).astype(compute_dtype)
    w_mat = jnp.transpose(w_p, (0, 2, 3, 1)).reshape(cout, 9 * cin_pad)
    b2 = bias.reshape(cout, 1).astype(jnp.float32)

    tap_offsets = tuple(ky * wp + kx for ky in range(3) for kx in range(3))

    out_flat = pl.pallas_call(
        functools.partial(_conv3x3_elu_kernel, tap_offsets=tap_offsets, out_tile=out_tile),
        out_shape=jax.ShapeDtypeStruct((n, cout, out_len_pad), x_nchw.dtype),
        grid_spec=pltpu.PrefetchScalarGridSpec(
            num_scalar_prefetch=0,
            grid=(n, rt),
            in_specs=[
                pl.BlockSpec((1, 1, cin_pad, in_tile), lambda b, r: (b, r, 0, 0)),
                pl.BlockSpec((cout, 9 * cin_pad), lambda b, r: (0, 0)),
                pl.BlockSpec((cout, 1), lambda b, r: (0, 0)),
            ],
            out_specs=pl.BlockSpec((1, cout, out_tile), lambda b, r: (b, 0, r)),
        ),
        compiler_params=pltpu.CompilerParams(
            dimension_semantics=("parallel", "parallel"),
        ),
    )(x_tiles, w_mat, b2)

    # Drop the spatial padding and the 2 wrap-around columns per row; already NCHW.
    out = out_flat[:, :, :total_out].reshape(n, cout, h, wp)[:, :, :, :w]
    return out


def _reference(x_nchw, weight, bias):
    # Pure-JAX reference: reflect pad + VALID conv + ELU, NCHW.
    xp = jnp.pad(x_nchw, ((0, 0), (0, 0), (1, 1), (1, 1)), mode="reflect")
    y = lax.conv_general_dilated(
        xp, weight, window_strides=(1, 1), padding="VALID",
        dimension_numbers=("NCHW", "OIHW", "NCHW"),
    ) + bias[None, :, None, None]
    return jnp.where(y > 0, y, jnp.expm1(y))


if __name__ == "__main__":
    key = jax.random.PRNGKey(0)
    k_x, k_w, k_b = jax.random.split(key, 3)

    N, Cin, Cout, H, W = 2, 4, 8, 16, 16

    x = jax.random.normal(k_x, (N, Cin, H, W), dtype=jnp.float32)

    # Deterministic params, PyTorch-default-style uniform init.
    fan_in = Cin * 3 * 3
    bound = 1.0 / (fan_in ** 0.5)
    weight = jax.random.uniform(k_w, (Cout, Cin, 3, 3), jnp.float32, -bound, bound)
    bias = jax.random.uniform(k_b, (Cout,), jnp.float32, -bound, bound)

    ref = jax.block_until_ready(_reference(x, weight, bias))

    # Default tile choice (single spatial tile at this size).
    out = jax.block_until_ready(conv_block_forward(x, weight, bias))
    assert out.shape == (N, Cout, H, W)
    assert jnp.allclose(out, ref, atol=1e-4, rtol=1e-4), "mismatch vs reference (single tile)"

    # Force the multi-tile spatial path (3 tiles of 128 lanes) to exercise halos + padding.
    out_tiled = jax.block_until_ready(conv_block_forward(x, weight, bias, max_out_tile=128))
    assert jnp.allclose(out_tiled, ref, atol=1e-4, rtol=1e-4), "mismatch vs reference (tiled)"

    print("KERNEL_OK")
</pallas_src>

<mosaic_0001>
module attributes {stable_mosaic.version = 11 : i64} {
  func.func @_conv3x3_elu_kernel(%arg0: i32, %arg1: i32, %arg2: memref<1x1x8x512xf32, #tpu.memory_space<vmem>>, %arg3: memref<8x72xf32, #tpu.memory_space<vmem>>, %arg4: memref<8x1xf32, #tpu.memory_space<vmem>>, %arg5: memref<1x8x384xf32, #tpu.memory_space<vmem>>) attributes {dimension_semantics = [#tpu.dimension_semantics<parallel>, #tpu.dimension_semantics<parallel>], iteration_bounds = array<i64: 2, 1>, scalar_prefetch = 0 : i64, scratch_operands = 0 : i64, tpu.core_type = #tpu.core_type<tc>, window_params = [{transform_indices = @transform_0, window_bounds = array<i64: 1, 1, 8, 512>}, {pipeline_mode = #tpu.pipeline_mode<synchronous>, transform_indices = @transform_1, window_bounds = array<i64: 8, 72>}, {pipeline_mode = #tpu.pipeline_mode<synchronous>, transform_indices = @transform_2, window_bounds = array<i64: 8, 1>}, {transform_indices = @transform_3, window_bounds = array<i64: 1, 8, 384>}]} {
    %c0 = arith.constant 0 : index
    %c0_0 = arith.constant 0 : index
    %c0_1 = arith.constant 0 : index
    %c0_2 = arith.constant 0 : index
    %0 = vector.load %arg2[%c0, %c0_0, %c0_1, %c0_2] : memref<1x1x8x512xf32, #tpu.memory_space<vmem>>, vector<1x1x8x512xf32>
    %1 = vector.shape_cast %0 : vector<1x1x8x512xf32> to vector<8x512xf32>
    %2 = vector.extract_strided_slice %1 {offsets = [0, 0], sizes = [8, 384], strides = [1, 1]} : vector<8x512xf32> to vector<8x384xf32>
    %3 = vector.extract_strided_slice %1 {offsets = [0, 1], sizes = [8, 384], strides = [1, 1]} : vector<8x512xf32> to vector<8x384xf32>
    %4 = vector.extract_strided_slice %1 {offsets = [0, 2], sizes = [8, 384], strides = [1, 1]} : vector<8x512xf32> to vector<8x384xf32>
    %5 = vector.extract_strided_slice %1 {offsets = [0, 18], sizes = [8, 384], strides = [1, 1]} : vector<8x512xf32> to vector<8x384xf32>
    %6 = vector.extract_strided_slice %1 {offsets = [0, 19], sizes = [8, 384], strides = [1, 1]} : vector<8x512xf32> to vector<8x384xf32>
    %7 = vector.extract_strided_slice %1 {offsets = [0, 20], sizes = [8, 384], strides = [1, 1]} : vector<8x512xf32> to vector<8x384xf32>
    %8 = vector.extract_strided_slice %1 {offsets = [0, 36], sizes = [8, 384], strides = [1, 1]} : vector<8x512xf32> to vector<8x384xf32>
    %9 = vector.extract_strided_slice %1 {offsets = [0, 37], sizes = [8, 384], strides = [1, 1]} : vector<8x512xf32> to vector<8x384xf32>
    %10 = vector.extract_strided_slice %1 {offsets = [0, 38], sizes = [8, 384], strides = [1, 1]} : vector<8x512xf32> to vector<8x384xf32>
    %11 = tpu.concatenate %2, %3, %4, %5, %6, %7, %8, %9, %10 in 0 : vector<8x384xf32>, vector<8x384xf32>, vector<8x384xf32>, vector<8x384xf32>, vector<8x384xf32>, vector<8x384xf32>, vector<8x384xf32>, vector<8x384xf32>, vector<8x384xf32> -> vector<72x384xf32>
    %c0_3 = arith.constant 0 : index
    %c0_4 = arith.constant 0 : index
    %12 = vector.load %arg3[%c0_3, %c0_4] : memref<8x72xf32, #tpu.memory_space<vmem>>, vector<8x72xf32>
    %cst = arith.constant dense<0.000000e+00> : vector<8x384xf32>
    %13 = tpu.matmul %12, %11, %cst {dimension_numbers = #tpu.dot_dimension_numbers<[1], [0], [0], [1], [0, 0, 1, 1], [], []>} : vector<8x72xf32>, vector<72x384xf32>, vector<8x384xf32> -> vector<8x384xf32>
    %c0_5 = arith.constant 0 : index
    %c0_6 = arith.constant 0 : index
    %14 = vector.load %arg4[%c0_5, %c0_6] : memref<8x1xf32, #tpu.memory_space<vmem>>, vector<8x1xf32>
    %15 = vector.broadcast %14 : vector<8x1xf32> to vector<8x384xf32>
    %16 = arith.addf %13, %15 : vector<8x384xf32>
    %cst_7 = arith.constant 0.000000e+00 : f32
    %17 = vector.broadcast %cst_7 : f32 to vector<8x384xf32>
    %18 = arith.minimumf %16, %17 : vector<8x384xf32>
    %19 = math.exp %18 : vector<8x384xf32>
    %cst_8 = arith.constant 1.000000e+00 : f32
    %20 = vector.broadcast %cst_8 : f32 to vector<8x384xf32>
    %21 = arith.subf %19, %20 : vector<8x384xf32>
    %cst_9 = arith.constant 0.000000e+00 : f32
    %22 = vector.broadcast %cst_9 : f32 to vector<8x384xf32>
    %23 = arith.cmpf ogt, %16, %22 : vector<8x384xf32>
    %24 = arith.select %23, %16, %21 : vector<8x384xi1>, vector<8x384xf32>
    %c0_10 = arith.constant 0 : index
    %c0_11 = arith.constant 0 : index
    %c0_12 = arith.constant 0 : index
    %25 = vector.load %arg5[%c0_10, %c0_11, %c0_12] : memref<1x8x384xf32, #tpu.memory_space<vmem>>, vector<1x8x384xf32>
    %26 = vector.shape_cast %25 : vector<1x8x384xf32> to vector<8x384xf32>
    %27 = vector.shape_cast %24 : vector<8x384xf32> to vector<1x8x384xf32>
    tpu.vector_store %arg5[%c0_10, %c0_11, %c0_12], %27 {strides = array<i32>} : memref<1x8x384xf32, #tpu.memory_space<vmem>>, vector<1x8x384xf32>,
    return
  }
  func.func @transform_0(%arg0: i32, %arg1: i32) -> (i32, i32, i32, i32) {
    %c0_i32 = arith.constant 0 : i32
    %c0_i32_0 = arith.constant 0 : i32
    %c0_i32_1 = arith.constant 0 : i32
    return %arg0, %arg1, %c0_i32, %c0_i32_0 : i32, i32, i32, i32
  }
  func.func @transform_1(%arg0: i32, %arg1: i32) -> (i32, i32) {
    %c0_i32 = arith.constant 0 : i32
    %c0_i32_0 = arith.constant 0 : i32
    %c0_i32_1 = arith.constant 0 : i32
    return %c0_i32, %c0_i32_0 : i32, i32
  }
  func.func @transform_2(%arg0: i32, %arg1: i32) -> (i32, i32) {
    %c0_i32 = arith.constant 0 : i32
    %c0_i32_0 = arith.constant 0 : i32
    %c0_i32_1 = arith.constant 0 : i32
    return %c0_i32, %c0_i32_0 : i32, i32
  }
  func.func @transform_3(%arg0: i32, %arg1: i32) -> (i32, i32, i32) {
    %c0_i32 = arith.constant 0 : i32
    %c0_i32_0 = arith.constant 0 : i32
    return %arg0, %c0_i32, %arg1 : i32, i32, i32
  }
}

</mosaic_0001>

<bundles_post_ra>
// kernel: conv_block_forward.1
= control target key start
LH: loop header
LB: loop body
LE: loop exit
PB: predicated region body
PF: predicated region fallthrough
CT: control target
= control target key end

     0   :  { %s744_s12 = smov 0   ;;  %s746_s13 = smov 0   ;;  %s855_s0 = inlined_call_operand.vmem [shape: f32[2,1,8,512], index: 0, kind: input, shape index: {}]   ;;  %s856_s1 = inlined_call_operand.vmem [shape: f32[8,72], index: 1, kind: input, shape index: {}]   ;;  %s857_s2 = inlined_call_operand.vmem [shape: f32[8,1], index: 2, kind: input, shape index: {}]   ;;  %s858_s3 = inlined_call_operand.vmem [shape: f32[2,8,384], index: 3, kind: output, shape index: {}]  }
   0x1   :  { %s748_s14 = smov 0  }
   0x2 LB: > { %s25_s15 = sadd.s32 1, %s707_s13  ;;  %p603_p0 = scmp.ge.s32.totalorder %s711_s14, 1  ;;  %s711_s14 = sphi %s748_s14, %s13_s14   ;;  %s707_s13 = sphi %s746_s13, %s860_s13   ;;  %s703_s12 = sphi %s744_s12, %s859_s12  }
   0x3   : > { %p27_p1 = scmp.ge.s32.totalorder %s25_s15, 2  ;;  %p157_p2 = scmp.lt.s32.totalorder %s711_s14, 3 }
   0x5   : > { %s862_s15 = smov (%p27_p1, %s25_s15), 0  ;;  %p158_p3 = pnand %p603_p0, %p157_p2 }
   0x6   : > { %p189_p4 = scmp.lt.s32.totalorder (!%p158_p3), %s703_s12, 1  ;;  %s714_s20 = smov (!%p158_p3), 90  }
   0x7   : > { %161 = sbr.rel (%p158_p3) target bundleno = 414 (0x19e), region = 32  ;;  %s715_s21 = smov (!%p158_p3), 91  }
   0x8   : > { %s716_s22 = smov (!%p158_p3), 92   ;;  %s717_s23 = smov (!%p158_p3), 108  }
   0x9   : > { %s718_s24 = smov (!%p158_p3), 109   ;;  %s719_s25 = smov (!%p158_p3), 110  }
   0xa   : > { %s720_s26 = smov (!%p158_p3), 126   ;;  %s721_s27 = smov (!%p158_p3), 127  }
   0xc   : > { %s864_s12 = smov (!%p189_p4, %s703_s12), 1  ;;  %v713_v2 = vmov 0.0   ;;  %vm722_vm0 = vmmov 0   ;;  %v723_v5 = vmov 0   ;;  %v337_v6 = vld [vmem:[%s857_s2] sm:$0xff]  ;;  %vm329_vm1 = vcmask 736256  }
   0xd   : > { %s614_s16 = sshll.u32 %s864_s12, 5  ;;  %625 = vmatprep.subr.mxu1 %v713_v2  ;;  %411 = vmatprep.mubr.f32.mxu0 %v713_v2  ;;  %vm314_vm2 = vcmask 744448   ;;  %vm299_vm3 = vcmask 752640   ;;  %vm284_vm4 = vcmask 883712   ;;  %vm269_vm5 = vcmask 891904   ;;  %v336_v59 = vld [vmem:[%s856_s1] sm:$0xff] }
   0xe   : > { %s197_s19 = scalar_lea.vmem %s855_s0, %s614_s16  ;;  %643 = vmatprep.mubr.msk.f32.mxu1 %vm722_vm0, %v713_v2  ;;  %682 = vset.pattern.permute.xlu0 %v723_v5  ;;  %vm254_vm6 = vcmask 900096   ;;  %vm239_vm7 = vcmask 1031168   ;;  %vm224_vm8 = vcmask 1039360   ;;  %vm343_vm9 = vcmask 588800   ;;  %s646_s5 = smul.u32 24, %s864_s12 }
   0xf   : > { %v768_v0 = vld [vmem:[%s197_s19 + $0x8] sm:$0xff]  ;;  %v770_v1 = vld [vmem:[%s197_s19] sm:$0xff]  ;;  %v776_v3 = vld [vmem:[%s197_s19 + $0x10] sm:$0xff] }
  0x10   : > { %323 = vrot.lane.b32.xlu0 %v768_v0, %s714_s20  ;;  %321 = vrot.lane.b32.xlu1 %v770_v1, %s714_s20  ;;  %v211_v4 = vld [vmem:[%s197_s19 + $0x18] sm:$0xff]  ;;  %s206_s8 = scalar_lea.vmem %s858_s3, %s646_s5 }
  0x14   : > { %325 = vrot.lane.b32.xlu0 %v776_v3, %s714_s20  ;;  %308 = vrot.lane.b32.xlu1 %v768_v0, %s715_s21 }
  0x18   : > { %310 = vrot.lane.b32.xlu0 %v776_v3, %s715_s21  ;;  %306 = vrot.lane.b32.xlu1 %v770_v1, %s715_s21 }
  0x1c   : > { %327 = vrot.lane.b32.xlu0 %v211_v4, %s714_s20  ;;  %293 = vrot.lane.b32.xlu1 %v768_v0, %s716_s22 }
  0x20   : > { %295 = vrot.lane.b32.xlu0 %v776_v3, %s716_s22  ;;  %291 = vrot.lane.b32.xlu1 %v770_v1, %s716_s22 }
  0x24   : > { %312 = vrot.lane.b32.xlu0 %v211_v4, %s715_s21  ;;  %278 = vrot.lane.b32.xlu1 %v768_v0, %s717_s23 }
  0x28   : > { %280 = vrot.lane.b32.xlu0 %v776_v3, %s717_s23  ;;  %276 = vrot.lane.b32.xlu1 %v770_v1, %s717_s23 }
  0x2c   : > { %297 = vrot.lane.b32.xlu0 %v211_v4, %s716_s22  ;;  %263 = vrot.lane.b32.xlu1 %v768_v0, %s718_s24 }
  0x30   : > { %265 = vrot.lane.b32.xlu0 %v776_v3, %s718_s24  ;;  %261 = vrot.lane.b32.xlu1 %v770_v1, %s718_s24 }
  0x34   : > { %282 = vrot.lane.b32.xlu0 %v211_v4, %s717_s23  ;;  %248 = vrot.lane.b32.xlu1 %v768_v0, %s719_s25 }
  0x38   : > { %250 = vrot.lane.b32.xlu0 %v776_v3, %s719_s25  ;;  %246 = vrot.lane.b32.xlu1 %v770_v1, %s719_s25 }
  0x3c   : > { %267 = vrot.lane.b32.xlu0 %v211_v4, %s718_s24  ;;  %233 = vrot.lane.b32.xlu1 %v768_v0, %s720_s26 }
  0x40   : > { %235 = vrot.lane.b32.xlu0 %v776_v3, %s720_s26  ;;  %231 = vrot.lane.b32.xlu1 %v770_v1, %s720_s26 }
  0x44   : > { %252 = vrot.lane.b32.xlu0 %v211_v4, %s719_s25  ;;  %218 = vrot.lane.b32.xlu1 %v768_v0, %s721_s27 }
  0x48   : > { %220 = vrot.lane.b32.xlu0 %v776_v3, %s721_s27  ;;  %216 = vrot.lane.b32.xlu1 %v770_v1, %s721_s27 }
  0x4c   : > { %237 = vrot.lane.b32.xlu0 %v211_v4, %s720_s26  ;;  %222 = vrot.lane.b32.xlu1 %v211_v4, %s721_s27 }
  0x50   : > { %340 = vperm.xlu0 %682, %v337_v6  }
  0x82   : > { %v324_v7 = vpop.permute.xlu0 %323  ;;  %v322_v8 = vpop.permute.xlu1 %321 }
  0x83   : > { %v330_v12 = vsel %vm329_vm1, %v322_v8, %v324_v7 }
  0x86   : > { %v326_v9 = vpop.permute.xlu0 %325  ;;  %v309_v10 = vpop.permute.xlu1 %308 }
  0x87   : > { %v331_v11 = vsel %vm329_vm1, %v324_v7, %v326_v9 }
  0x88   : > { %361 = vmatprep.subr.mxu0 %v331_v11 }
  0x89   : > { %362 = vmatpush1.msra.mxu0 %v330_v12 }
  0x8a   : > { %v311_v13 = vpop.permute.xlu0 %310  ;;  %v307_v14 = vpop.permute.xlu1 %306 }
  0x8b   : > { %v316_v15 = vsel %vm314_vm2, %v309_v10, %v311_v13  ;;  %v315_v16 = vsel %vm314_vm2, %v307_v14, %v309_v10 }
  0x8c   : > { %363 = vmatprep.subr.mxu0 %v316_v15 }
  0x8d   : > { %364 = vmatpush1.msra.mxu0 %v315_v16 }
  0x8e   : > { %v328_v17 = vpop.permute.xlu0 %327  ;;  %v294_v18 = vpop.permute.xlu1 %293 }
  0x8f   : > { %v332_v19 = vsel %vm329_vm1, %v326_v9, %v328_v17 }
  0x90   : > { %626 = vmatpush3.msra.mxu1 %v332_v19 }
  0x91   : > { %627 = vmatprep.subr.mxu1 %v713_v2 }
  0x92   : > { %v296_v20 = vpop.permute.xlu0 %295  ;;  %v292_v21 = vpop.permute.xlu1 %291 }
  0x93   : > { %v301_v22 = vsel %vm299_vm3, %v294_v18, %v296_v20  ;;  %v300_v23 = vsel %vm299_vm3, %v292_v21, %v294_v18 }
  0x94   : > { %365 = vmatprep.subr.mxu0 %v301_v22 }
  0x95   : > { %366 = vmatpush1.msra.mxu0 %v300_v23 }
  0x96   : > { %v313_v24 = vpop.permute.xlu0 %312  ;;  %v279_v25 = vpop.permute.xlu1 %278 }
  0x97   : > { %v317_v26 = vsel %vm314_vm2, %v311_v13, %v313_v24 }
  0x98   : > { %628 = vmatpush3.msra.mxu1 %v317_v26 }
  0x99   : > { %629 = vmatprep.subr.mxu1 %v713_v2 }
  0x9a   : > { %v281_v27 = vpop.permute.xlu0 %280  ;;  %v277_v28 = vpop.permute.xlu1 %276 }
  0x9b   : > { %v286_v29 = vsel %vm284_vm4, %v279_v25, %v281_v27  ;;  %v285_v30 = vsel %vm284_vm4, %v277_v28, %v279_v25 }
  0x9c   : > { %367 = vmatprep.subr.mxu0 %v286_v29 }
  0x9d   : > { %368 = vmatpush1.msra.mxu0 %v285_v30 }
  0x9e   : > { %v298_v31 = vpop.permute.xlu0 %297  ;;  %v264_v32 = vpop.permute.xlu1 %263 }
  0x9f   : > { %v302_v33 = vsel %vm299_vm3, %v296_v20, %v298_v31 }
  0xa0   : > { %630 = vmatpush3.msra.mxu1 %v302_v33 }
  0xa1   : > { %631 = vmatprep.subr.mxu1 %v713_v2 }
  0xa2   : > { %v266_v34 = vpop.permute.xlu0 %265  ;;  %v262_v35 = vpop.permute.xlu1 %261 }
  0xa3   : > { %v271_v36 = vsel %vm269_vm5, %v264_v32, %v266_v34  ;;  %v270_v37 = vsel %vm269_vm5, %v262_v35, %v264_v32 }
  0xa4   : > { %369 = vmatprep.subr.mxu0 %v271_v36 }
  0xa5   : > { %370 = vmatpush1.msra.mxu0 %v270_v37 }
  0xa6   : > { %v283_v38 = vpop.permute.xlu0 %282  ;;  %v249_v39 = vpop.permute.xlu1 %248 }
  0xa7   : > { %v287_v40 = vsel %vm284_vm4, %v281_v27, %v283_v38 }
  0xa8   : > { %632 = vmatpush3.msra.mxu1 %v287_v40 }
  0xa9   : > { %633 = vmatprep.subr.mxu1 %v713_v2 }
  0xaa   : > { %v251_v41 = vpop.permute.xlu0 %250  ;;  %v247_v42 = vpop.permute.xlu1 %246 }
  0xab   : > { %v256_v43 = vsel %vm254_vm6, %v249_v39, %v251_v41  ;;  %v255_v44 = vsel %vm254_vm6, %v247_v42, %v249_v39 }
  0xac   : > { %371 = vmatprep.subr.mxu0 %v256_v43 }
  0xad   : > { %372 = vmatpush1.msra.mxu0 %v255_v44 }
  0xae   : > { %v268_v45 = vpop.permute.xlu0 %267  ;;  %v234_v46 = vpop.permute.xlu1 %233 }
  0xaf   : > { %v272_v47 = vsel %vm269_vm5, %v266_v34, %v268_v45 }
  0xb0   : > { %634 = vmatpush3.msra.mxu1 %v272_v47 }
  0xb1   : > { %635 = vmatprep.subr.mxu1 %v713_v2 }
  0xb2   : > { %v236_v48 = vpop.permute.xlu0 %235  ;;  %v232_v49 = vpop.permute.xlu1 %231 }
  0xb3   : > { %v241_v50 = vsel %vm239_vm7, %v234_v46, %v236_v48  ;;  %v240_v51 = vsel %vm239_vm7, %v232_v49, %v234_v46 }
  0xb4   : > { %373 = vmatprep.subr.mxu0 %v241_v50 }
  0xb5   : > { %374 = vmatpush1.msra.mxu0 %v240_v51 }
  0xb6   : > { %v253_v52 = vpop.permute.xlu0 %252  ;;  %v219_v53 = vpop.permute.xlu1 %218 }
  0xb7   : > { %v257_v54 = vsel %vm254_vm6, %v251_v41, %v253_v52 }
  0xb8   : > { %636 = vmatpush3.msra.mxu1 %v257_v54 }
  0xb9   : > { %637 = vmatprep.subr.mxu1 %v713_v2 }
  0xba   : > { %v221_v55 = vpop.permute.xlu0 %220  ;;  %v217_v56 = vpop.permute.xlu1 %216 }
  0xbb   : > { %v226_v57 = vsel %vm224_vm8, %v219_v53, %v221_v55  ;;  %v225_v58 = vsel %vm224_vm8, %v217_v56, %v219_v53 }
  0xbc   : > { %375 = vmatprep.subr.mxu0 %v226_v57 }
  0xbd   : > { %376 = vmatpush1.msra.mxu0 %v225_v58 }
  0xbe   : > { %v238_v60 = vpop.permute.xlu0 %237  ;;  %377 = vmatprep.subr.mxu0 %v768_v0  ;;  %v223_v61 = vpop.permute.xlu1 %222 }
  0xbf   : > { %378 = vmatpush1.msra.mxu0 %v770_v1  ;;  %v242_v62 = vsel %vm239_vm7, %v236_v48, %v238_v60  ;;  %v227_v63 = vsel %vm224_vm8, %v221_v55, %v223_v61 }
  0xc0   : > { %607 = vmatmul.mubr.msk.f32.vlgmr.msra.gmra.mxu0 %vm343_vm9, %v336_v59  ;;  %638 = vmatpush3.msra.mxu1 %v242_v62 }
  0xc1   : > { %639 = vmatprep.subr.mxu1 %v713_v2 }
  0xc2   : > { %640 = vmatpush3.msra.mxu1 %v227_v63 }
  0xc3   : > { %641 = vmatprep.subr.mxu1 %v713_v2 }
  0xc4   : > { %642 = vmatpush3.msra.mxu1 %v776_v3 }
  0xc5   : > { %644 = vmatmul.mubr.msk.f32.vlgmr.msra.gmra.mxu1 %vm343_vm9, %v336_v59 }
  0xcb   : > { %v341_v4 = vpop.permute.xlu0 %340 }
 0x180   : > { %v413_v5 = vpop.f32.mrf.mxu0 }
 0x181   : > { %v414_v0 = vadd.f32 %v413_v5, %v341_v4 }
 0x182   : > { %v415_v6 = vpop.f32.mrf.mxu0 }
 0x183   : > { %v488_v1 = vmin.f32 %v414_v0, 0.0  ;;  %v416_v7 = vadd.f32 %v415_v6, %v341_v4  ;;  %vm500_vm10 = vcmp.gt.f32.partialorder %v414_v0, 0.0 }
 0x185   : > { %v491_v8 = vmul.f32 1.442695, %v488_v1  ;;  %v489_v9 = vmin.f32 %v416_v7, 0.0  ;;  %v484_v10 = vpop.f32.mrf.mxu1  ;;  %vm501_vm11 = vcmp.gt.f32.partialorder %v416_v7, 0.0 }
 0x186   : > { %v485_v11 = vadd.f32 %v484_v10, %v341_v4 }
 0x187   : > { %683 = vpow2.f32 %v491_v8  ;;  %v493_v12 = vmul.f32 1.442695, %v489_v9  ;;  %v645_v13 = vpop.f32.mrf.mxu1 }
 0x188   : > { %v490_v14 = vmin.f32 %v485_v11, 0.0  ;;  %vm502_vm12 = vcmp.gt.f32.partialorder %v485_v11, 0.0 }
 0x189   : > { %685 = vpow2.f32 %v493_v12 }
 0x18a   : > { %v495_v2 = vmul.f32 1.442695, %v490_v14 }
 0x18c   : > { %687 = vpow2.f32 %v495_v2 }
 0x194   : > { %v684_v3 = vpop.eup %683 }
 0x195   : > { %v609_v15 = vadd.f32 -1.0, %v684_v3 }
 0x196   : > { %v686_v16 = vpop.eup %685 }
 0x197   : > { %v503_v17 = vsel %vm500_vm10, %v414_v0, %v609_v15  ;;  %v610_v18 = vadd.f32 -1.0, %v686_v16 }
 0x198   : > { %506 = vst [vmem:[%s206_s8] sm:$0xff] %v503_v17 }
 0x199   : > { %v688_v19 = vpop.eup %687  ;;  %v504_v20 = vsel %vm501_vm11, %v416_v7, %v610_v18 }
 0x19a   : > { %507 = vst [vmem:[%s206_s8 + $0x8] sm:$0xff] %v504_v20  ;;  %v611_v21 = vadd.f32 -1.0, %v688_v19 }
 0x19c   : > { %v505_v22 = vsel %vm502_vm12, %v485_v11, %v611_v21 }
 0x19d   : > { %508 = vst [vmem:[%s206_s8 + $0x10] sm:$0xff] %v505_v22 }
 0x19e PF: > { %s13_s14 = sadd.s32 1, %s711_s14   ;;  %s859_s12 = smov %s707_s13 }
 0x19f   : > { %p10_p5 = scmp.ge.s32.totalorder %s13_s14, 4   ;;  %s860_s13 = smov %s862_s15 }
 0x1a1   :  { %12 = sbr.rel (!%p10_p5) target bundleno = 2 (0x2), region = 62 }

</bundles_post_ra>
